<compile_context>
chip_gen: v7x
topology: tpu7x:2x2x1
jax: 0.10.0
libtpu: 0.0.40
codegen_flags: <defaults>
</compile_context>

<pallas_src>
import math

import jax
import jax.numpy as jnp
from jax.experimental import pallas as pl
from jax.experimental.pallas import tpu as pltpu

_INV_SQRT2 = 1.0 / math.sqrt(2.0)
_SQRT_2_OVER_PI = math.sqrt(2.0 / math.pi)


# ----------------------------------------------------------------------------- utils
def _vmem_capacity_bytes() -> int:
    try:
        return int(pltpu.get_tpu_info().vmem_capacity_bytes)
    except Exception:
        return 64 << 20  # conservative default: v7x per-TensorCore VMEM


def _sublane_align(*dtypes) -> int:
    size = min(jnp.dtype(d).itemsize for d in dtypes)
    return {4: 8, 2: 16, 1: 32}.get(size, 8)


def _gelu(y, approximate):
    if approximate:
        # tanh-approximate GELU: executes on the EUP (separate VLIW slot).
        return 0.5 * y * (1.0 + jnp.tanh(_SQRT_2_OVER_PI * (y + 0.044715 * y * y * y)))
    # exact erf GELU (matches PyTorch / HF "gelu")
    return 0.5 * y * (1.0 + jax.lax.erf(y * _INV_SQRT2))


def _epilogue(y, b, g, be, *, eps, inv_h, approximate_gelu):
    """bias + GELU + LayerNorm with one-pass statistics, all in f32."""
    y = y + b
    y = _gelu(y, approximate_gelu)
    s1 = jnp.sum(y, axis=-1, keepdims=True)
    s2 = jnp.sum(y * y, axis=-1, keepdims=True)
    mean = s1 * inv_h
    var = jnp.maximum(s2 * inv_h - mean * mean, 0.0)
    inv = jax.lax.rsqrt(var + eps)
    return (y - mean) * inv * g + be


# --------------------------------------------------------------------------- kernels
def _make_resident_kernel(eps, inv_h, mxu_dtype, approximate_gelu):
    """Whole (H, H) weight resident in VMEM; 1-D grid over row tiles."""

    def kernel(x_ref, w_ref, b_ref, g_ref, be_ref, o_ref):
        x = x_ref[...]
        w = w_ref[...]
        if mxu_dtype is not None:
            x = x.astype(mxu_dtype)
            w = w.astype(mxu_dtype)
        y = jnp.dot(x, w, preferred_element_type=jnp.float32)
        out = _epilogue(y,
                        b_ref[...].astype(jnp.float32),
                        g_ref[...].astype(jnp.float32),
                        be_ref[...].astype(jnp.float32),
                        eps=eps, inv_h=inv_h, approximate_gelu=approximate_gelu)
        o_ref[...] = out.astype(o_ref.dtype)

    return kernel


def _make_ktiled_kernel(eps, inv_h, mxu_dtype, approximate_gelu):
    """K-tiled accumulator path for weights too large to stay resident."""

    def kernel(x_ref, w_ref, b_ref, g_ref, be_ref, o_ref, acc_ref):
        k = pl.program_id(1)

        @pl.when(k == 0)
        def _():
            acc_ref[...] = jnp.zeros_like(acc_ref)

        x = x_ref[...]
        w = w_ref[...]
        if mxu_dtype is not None:
            x = x.astype(mxu_dtype)
            w = w.astype(mxu_dtype)
        acc_ref[...] += jnp.dot(x, w, preferred_element_type=jnp.float32)

        @pl.when(k == pl.num_programs(1) - 1)
        def _():
            out = _epilogue(acc_ref[...],
                            b_ref[...].astype(jnp.float32),
                            g_ref[...].astype(jnp.float32),
                            be_ref[...].astype(jnp.float32),
                            eps=eps, inv_h=inv_h, approximate_gelu=approximate_gelu)
            o_ref[...] = out.astype(o_ref.dtype)

    return kernel


# ------------------------------------------------------------------------ tiling math
def _choose_block_m(M, H, x_itemsize, o_itemsize, resident_bytes, budget, align,
                    block_k=None):
    k_stream = H if block_k is None else block_k
    per_row = (2 * k_stream * x_itemsize      # double-buffered x tiles
               + 2 * H * o_itemsize           # double-buffered output tiles
               + 4 * H * 4)                   # f32 accumulator / epilogue temporaries
    avail = max(budget - resident_bytes, per_row * align)
    tm = int(avail // per_row)
    tm = max(align, min(tm, 1024))
    if tm >= M:
        return M
    return max(align, (tm // align) * align)


# ---------------------------------------------------------------------------- wrapper
def bert_prediction_head_transform(hidden_states, w, b, gamma, beta, eps, *,
                                   block_m=None, block_k=None,
                                   approximate_gelu=False,
                                   force_bf16_matmul=False,
                                   force_ktiled=False):
    """Fused dense(H->H) + GELU + LayerNorm.

    hidden_states: (..., H). w: (H, H) stored (in, out) -- i.e. nn.Linear.weight
    transposed. b / gamma / beta: (H,).
    """
    orig_shape = hidden_states.shape
    H = orig_shape[-1]
    x = hidden_states.reshape(-1, H)
    M = x.shape[0]
    out_dtype = hidden_states.dtype

    # ---- MXU operand dtype ---------------------------------------------------
    low_precision_inputs = (jnp.dtype(x.dtype).itemsize <= 2
                            or jnp.dtype(w.dtype).itemsize <= 2)
    use_bf16_matmul = bool(force_bf16_matmul or low_precision_inputs)
    if use_bf16_matmul and w.dtype != jnp.bfloat16:
        w = w.astype(jnp.bfloat16)            # halves the resident-weight footprint
    mxu_dtype = jnp.bfloat16 if use_bf16_matmul else None

    x_itemsize = jnp.dtype(x.dtype).itemsize
    o_itemsize = jnp.dtype(out_dtype).itemsize
    w_itemsize = jnp.dtype(w.dtype).itemsize
    w_bytes = w.size * w_itemsize
    param_bytes = 3 * H * 4

    capacity = _vmem_capacity_bytes()
    budget = int(capacity * 0.75)
    align = _sublane_align(x.dtype, out_dtype)

    # ---- path selection --------------------------------------------------------
    can_ktile = (H % 128 == 0)
    use_ktiled = bool(force_ktiled or (can_ktile and w_bytes > capacity // 3))
    if use_ktiled and not can_ktile:
        use_ktiled = False
    if use_ktiled:
        if block_k is None:
            block_k = 512 if H % 512 == 0 else (256 if H % 256 == 0 else 128)
        block_k = min(block_k, H)
        assert H % block_k == 0, "block_k must divide the hidden size"
        resident = 2 * block_k * H * w_itemsize + param_bytes   # W streamed in K slices
    else:
        block_k = None
        resident = w_bytes + param_bytes                        # W resident (1-buffered)

    if block_m is None:
        block_m = _choose_block_m(M, H, x_itemsize, o_itemsize, resident, budget,
                                  align, block_k=block_k)
    block_m = max(1, min(block_m, M))

    inv_h = 1.0 / float(H)
    eps = float(eps)

    # ---- VMEM limit: working set + headroom, capped below physical capacity ----
    per_row = (2 * (block_k if use_ktiled else H) * x_itemsize
               + 2 * H * o_itemsize + 4 * H * 4)
    needed = resident + block_m * per_row
    vmem_limit = int(needed * 1.3) + (2 << 20)
    vmem_limit = max(vmem_limit, 16 << 20)
    vmem_limit = min(vmem_limit, capacity - (8 << 20))

    cost = pl.CostEstimate(
        flops=2 * M * H * H,
        transcendentals=M * H,
        bytes_accessed=(M * H * x_itemsize + M * H * o_itemsize
                        + w_bytes + param_bytes),
    )

    b2 = b.reshape(1, H)
    g2 = gamma.reshape(1, H)
    be2 = beta.reshape(1, H)

    def call(single_buffer_consts: bool):
        if use_ktiled:
            kernel = _make_ktiled_kernel(eps, inv_h, mxu_dtype, approximate_gelu)
            grid = (pl.cdiv(M, block_m), H // block_k)
            cmap = lambda i, k: (0, 0)

            def const_spec():
                if single_buffer_consts:
                    return pl.BlockSpec((1, H), cmap, pipeline_mode=pl.Buffered(1))
                return pl.BlockSpec((1, H), cmap)

            in_specs = [
                pl.BlockSpec((block_m, block_k), lambda i, k: (i, k)),  # x tiles
                pl.BlockSpec((block_k, H), lambda i, k: (k, 0)),        # W K-slices
                const_spec(), const_spec(), const_spec(),               # b / gamma / beta
            ]
            out_spec = pl.BlockSpec((block_m, H), lambda i, k: (i, 0))
            scratch = [pltpu.VMEM((block_m, H), jnp.float32)]
            dims = ("parallel", "arbitrary")
        else:
            kernel = _make_resident_kernel(eps, inv_h, mxu_dtype, approximate_gelu)
            grid = (pl.cdiv(M, block_m),)
            cmap = lambda i: (0, 0)

            def const_spec(shape):
                if single_buffer_consts:
                    return pl.BlockSpec(shape, cmap, pipeline_mode=pl.Buffered(1))
                return pl.BlockSpec(shape, cmap)

            in_specs = [
                pl.BlockSpec((block_m, H), lambda i: (i, 0)),  # x: streamed row tiles
                const_spec((H, H)),                            # W: resident, 1-buffered
                const_spec((1, H)), const_spec((1, H)), const_spec((1, H)),
            ]
            out_spec = pl.BlockSpec((block_m, H), lambda i: (i, 0))
            scratch = []
            dims = ("parallel",)

        return pl.pallas_call(
            kernel,
            out_shape=jax.ShapeDtypeStruct((M, H), out_dtype),
            grid=grid,
            in_specs=in_specs,
            out_specs=out_spec,
            scratch_shapes=scratch,
            compiler_params=pltpu.CompilerParams(
                dimension_semantics=dims,
                vmem_limit_bytes=vmem_limit,
            ),
            cost_estimate=cost,
        )(x, w, b2, g2, be2)

    try:
        out = call(True)
    except Exception:
        # Fallback for JAX versions that reject pipeline_mode=Buffered(1) on
        # grid-invariant operands; default double-buffering is always correct.
        out = call(False)

    return out.reshape(orig_shape)


# -------------------------------------------------------------------------- reference
def _reference(x, w, b, gamma, beta, eps, approximate_gelu=False):
    x = x.astype(jnp.float32)
    w = w.astype(jnp.float32)
    y = x @ w + b.astype(jnp.float32)
    y = _gelu(y, approximate_gelu)
    mean = jnp.mean(y, axis=-1, keepdims=True)
    var = jnp.mean((y - mean) ** 2, axis=-1, keepdims=True)
    return ((y - mean) / jnp.sqrt(var + eps) * gamma.astype(jnp.float32)
            + beta.astype(jnp.float32))


# TODO(synk): config.hidden_act may be an arbitrary callable in the PyTorch module;
#             this kernel exposes only exact-erf GELU and tanh-approximate GELU.

if __name__ == "__main__":
    key = jax.random.PRNGKey(0)

    def make_inputs(k, batch, seq, hidden, dtype):
        ks = jax.random.split(k, 5)
        bound = 1.0 / math.sqrt(hidden)
        x = jax.random.normal(ks[0], (batch, seq, hidden), dtype=jnp.float32)
        w = jax.random.uniform(ks[1], (hidden, hidden), minval=-bound, maxval=bound,
                               dtype=jnp.float32)
        b = jax.random.uniform(ks[2], (hidden,), minval=-bound, maxval=bound,
                               dtype=jnp.float32)
        g = 1.0 + 0.01 * jax.random.normal(ks[3], (hidden,), dtype=jnp.float32)
        be = 0.01 * jax.random.normal(ks[4], (hidden,), dtype=jnp.float32)
        cast = lambda a: a.astype(dtype)
        return cast(x), cast(w), cast(b), cast(g), cast(be)

    eps = 1e-12
    k1, k2, k3 = jax.random.split(key, 3)

    # --- Test 1: f32 inputs, resident-weight path, exact erf GELU (PyTorch-faithful)
    x, w, b, g, be = make_inputs(k1, 2, 8, 32, jnp.float32)
    out = jax.block_until_ready(
        bert_prediction_head_transform(x, w, b, g, be, eps, block_m=8))
    ref = _reference(x.reshape(-1, 32), w, b, g, be, eps).reshape(x.shape)
    assert out.shape == x.shape
    assert jnp.allclose(out, ref, atol=1e-4, rtol=1e-4), "f32 resident path mismatch"

    # --- Test 2: bf16 inputs -> bf16 MXU operands, 16-row sublane-aligned tiles
    xb, wb, bb, gb, beb = make_inputs(k2, 2, 16, 32, jnp.bfloat16)
    out_b = jax.block_until_ready(
        bert_prediction_head_transform(xb, wb, bb, gb, beb, eps, block_m=16))
    ref_b = _reference(xb.reshape(-1, 32), wb, bb, gb, beb, eps).reshape(xb.shape)
    assert jnp.allclose(out_b.astype(jnp.float32), ref_b, atol=3e-2, rtol=3e-2), \
        "bf16 path mismatch"

    # --- Test 3: K-tiled accumulator path (forced; H=256, block_k=128)
    xk, wk, bk, gk, bek = make_inputs(k3, 2, 8, 256, jnp.float32)
    out_k = jax.block_until_ready(
        bert_prediction_head_transform(xk, wk, bk, gk, bek, eps,
                                       block_m=8, block_k=128, force_ktiled=True))
    ref_k = _reference(xk.reshape(-1, 256), wk, bk, gk, bek, eps).reshape(xk.shape)
    assert jnp.allclose(out_k, ref_k, atol=1e-4, rtol=1e-4), "K-tiled path mismatch"

    print("KERNEL_OK")
</pallas_src>

<mosaic_0001>
module attributes {stable_mosaic.version = 11 : i64} {
  func.func @kernel(%arg0: i32, %arg1: memref<8x32xf32, #tpu.memory_space<vmem>>, %arg2: memref<32x32xf32, #tpu.memory_space<vmem>>, %arg3: memref<1x32xf32, #tpu.memory_space<vmem>>, %arg4: memref<1x32xf32, #tpu.memory_space<vmem>>, %arg5: memref<1x32xf32, #tpu.memory_space<vmem>>, %arg6: memref<8x32xf32, #tpu.memory_space<vmem>>) attributes {dimension_semantics = [#tpu.dimension_semantics<parallel>], iteration_bounds = array<i64: 2>, scalar_prefetch = 0 : i64, scratch_operands = 0 : i64, tpu.core_type = #tpu.core_type<tc>, window_params = [{transform_indices = @transform_0, window_bounds = array<i64: 8, 32>}, {pipeline_mode = #tpu.pipeline_mode<synchronous>, transform_indices = @transform_1, window_bounds = array<i64: 32, 32>}, {pipeline_mode = #tpu.pipeline_mode<synchronous>, transform_indices = @transform_2, window_bounds = array<i64: 1, 32>}, {pipeline_mode = #tpu.pipeline_mode<synchronous>, transform_indices = @transform_3, window_bounds = array<i64: 1, 32>}, {pipeline_mode = #tpu.pipeline_mode<synchronous>, transform_indices = @transform_4, window_bounds = array<i64: 1, 32>}, {transform_indices = @transform_5, window_bounds = array<i64: 8, 32>}]} {
    %c0 = arith.constant 0 : index
    %c0_0 = arith.constant 0 : index
    %0 = vector.load %arg1[%c0, %c0_0] : memref<8x32xf32, #tpu.memory_space<vmem>>, vector<8x32xf32>
    %c0_1 = arith.constant 0 : index
    %c0_2 = arith.constant 0 : index
    %1 = vector.load %arg2[%c0_1, %c0_2] : memref<32x32xf32, #tpu.memory_space<vmem>>, vector<32x32xf32>
    %cst = arith.constant dense<0.000000e+00> : vector<8x32xf32>
    %2 = tpu.matmul %0, %1, %cst {dimension_numbers = #tpu.dot_dimension_numbers<[1], [0], [0], [1], [0, 0, 1, 1], [], []>} : vector<8x32xf32>, vector<32x32xf32>, vector<8x32xf32> -> vector<8x32xf32>
    %c0_3 = arith.constant 0 : index
    %c0_4 = arith.constant 0 : index
    %3 = vector.load %arg3[%c0_3, %c0_4] : memref<1x32xf32, #tpu.memory_space<vmem>>, vector<1x32xf32>
    %c0_5 = arith.constant 0 : index
    %c0_6 = arith.constant 0 : index
    %4 = vector.load %arg4[%c0_5, %c0_6] : memref<1x32xf32, #tpu.memory_space<vmem>>, vector<1x32xf32>
    %c0_7 = arith.constant 0 : index
    %c0_8 = arith.constant 0 : index
    %5 = vector.load %arg5[%c0_7, %c0_8] : memref<1x32xf32, #tpu.memory_space<vmem>>, vector<1x32xf32>
    %6 = vector.broadcast %3 : vector<1x32xf32> to vector<8x32xf32>
    %7 = arith.addf %2, %6 : vector<8x32xf32>
    %cst_9 = arith.constant 5.000000e-01 : f32
    %8 = vector.broadcast %cst_9 : f32 to vector<8x32xf32>
    %9 = arith.mulf %8, %7 : vector<8x32xf32>
    %cst_10 = arith.constant 0.707106769 : f32
    %10 = vector.broadcast %cst_10 : f32 to vector<8x32xf32>
    %11 = arith.mulf %7, %10 : vector<8x32xf32>
    %12 = math.erf %11 : vector<8x32xf32>
    %cst_11 = arith.constant 1.000000e+00 : f32
    %13 = vector.broadcast %cst_11 : f32 to vector<8x32xf32>
    %14 = arith.addf %13, %12 : vector<8x32xf32>
    %15 = arith.mulf %9, %14 : vector<8x32xf32>
    %cst_12 = arith.constant dense<0.000000e+00> : vector<8xf32>
    %16 = vector.multi_reduction <add>, %15, %cst_12 [1] : vector<8x32xf32> to vector<8xf32>
    %17 = vector.shape_cast %16 : vector<8xf32> to vector<8x1xf32>
    %18 = arith.mulf %15, %15 : vector<8x32xf32>
    %cst_13 = arith.constant dense<0.000000e+00> : vector<8xf32>
    %19 = vector.multi_reduction <add>, %18, %cst_13 [1] : vector<8x32xf32> to vector<8xf32>
    %20 = vector.shape_cast %19 : vector<8xf32> to vector<8x1xf32>
    %cst_14 = arith.constant 3.125000e-02 : f32
    %21 = vector.broadcast %cst_14 : f32 to vector<8x1xf32>
    %22 = arith.mulf %17, %21 : vector<8x1xf32>
    %cst_15 = arith.constant 3.125000e-02 : f32
    %23 = vector.broadcast %cst_15 : f32 to vector<8x1xf32>
    %24 = arith.mulf %20, %23 : vector<8x1xf32>
    %25 = arith.mulf %22, %22 : vector<8x1xf32>
    %26 = arith.subf %24, %25 : vector<8x1xf32>
    %cst_16 = arith.constant 0.000000e+00 : f32
    %27 = vector.broadcast %cst_16 : f32 to vector<8x1xf32>
    %28 = arith.maximumf %26, %27 : vector<8x1xf32>
    %cst_17 = arith.constant 9.99999996E-13 : f32
    %29 = vector.broadcast %cst_17 : f32 to vector<8x1xf32>
    %30 = arith.addf %28, %29 : vector<8x1xf32>
    %31 = math.rsqrt %30 : vector<8x1xf32>
    %32 = vector.broadcast %22 : vector<8x1xf32> to vector<8x32xf32>
    %33 = arith.subf %15, %32 : vector<8x32xf32>
    %34 = vector.broadcast %31 : vector<8x1xf32> to vector<8x32xf32>
    %35 = arith.mulf %33, %34 : vector<8x32xf32>
    %36 = vector.broadcast %4 : vector<1x32xf32> to vector<8x32xf32>
    %37 = arith.mulf %35, %36 : vector<8x32xf32>
    %38 = vector.broadcast %5 : vector<1x32xf32> to vector<8x32xf32>
    %39 = arith.addf %37, %38 : vector<8x32xf32>
    %c0_18 = arith.constant 0 : index
    %c0_19 = arith.constant 0 : index
    %40 = vector.load %arg6[%c0_18, %c0_19] : memref<8x32xf32, #tpu.memory_space<vmem>>, vector<8x32xf32>
    tpu.vector_store %arg6[%c0_18, %c0_19], %39 {strides = array<i32>} : memref<8x32xf32, #tpu.memory_space<vmem>>, vector<8x32xf32>,
    return
  }
  func.func @transform_0(%arg0: i32) -> (i32, i32) {
    %c0_i32 = arith.constant 0 : i32
    %c0_i32_0 = arith.constant 0 : i32
    return %arg0, %c0_i32 : i32, i32
  }
  func.func @transform_1(%arg0: i32) -> (i32, i32) {
    %c0_i32 = arith.constant 0 : i32
    %c0_i32_0 = arith.constant 0 : i32
    %c0_i32_1 = arith.constant 0 : i32
    return %c0_i32, %c0_i32_0 : i32, i32
  }
  func.func @transform_2(%arg0: i32) -> (i32, i32) {
    %c0_i32 = arith.constant 0 : i32
    %c0_i32_0 = arith.constant 0 : i32
    %c0_i32_1 = arith.constant 0 : i32
    return %c0_i32, %c0_i32_0 : i32, i32
  }
  func.func @transform_3(%arg0: i32) -> (i32, i32) {
    %c0_i32 = arith.constant 0 : i32
    %c0_i32_0 = arith.constant 0 : i32
    %c0_i32_1 = arith.constant 0 : i32
    return %c0_i32, %c0_i32_0 : i32, i32
  }
  func.func @transform_4(%arg0: i32) -> (i32, i32) {
    %c0_i32 = arith.constant 0 : i32
    %c0_i32_0 = arith.constant 0 : i32
    %c0_i32_1 = arith.constant 0 : i32
    return %c0_i32, %c0_i32_0 : i32, i32
  }
  func.func @transform_5(%arg0: i32) -> (i32, i32) {
    %c0_i32 = arith.constant 0 : i32
    %c0_i32_0 = arith.constant 0 : i32
    return %arg0, %c0_i32 : i32, i32
  }
}

module attributes {stable_mosaic.version = 11 : i64} {
  func.func @kernel(%arg0: i32, %arg1: memref<8x32xf32, #tpu.memory_space<vmem>>, %arg2: memref<32x32xf32, #tpu.memory_space<vmem>>, %arg3: memref<1x32xf32, #tpu.memory_space<vmem>>, %arg4: memref<1x32xf32, #tpu.memory_space<vmem>>, %arg5: memref<1x32xf32, #tpu.memory_space<vmem>>, %arg6: memref<8x32xf32, #tpu.memory_space<vmem>>) attributes {dimension_semantics = [#tpu.dimension_semantics<parallel>], iteration_bounds = array<i64: 2>, scalar_prefetch = 0 : i64, scratch_operands = 0 : i64, tpu.core_type = #tpu.core_type<tc>, window_params = [{transform_indices = @transform_0, window_bounds = array<i64: 8, 32>}, {pipeline_mode = #tpu.pipeline_mode<synchronous>, transform_indices = @transform_1, window_bounds = array<i64: 32, 32>}, {pipeline_mode = #tpu.pipeline_mode<synchronous>, transform_indices = @transform_2, window_bounds = array<i64: 1, 32>}, {pipeline_mode = #tpu.pipeline_mode<synchronous>, transform_indices = @transform_3, window_bounds = array<i64: 1, 32>}, {pipeline_mode = #tpu.pipeline_mode<synchronous>, transform_indices = @transform_4, window_bounds = array<i64: 1, 32>}, {transform_indices = @transform_5, window_bounds = array<i64: 8, 32>}]} {
    %c0 = arith.constant 0 : index
    %c0_0 = arith.constant 0 : index
    %0 = vector.load %arg1[%c0, %c0_0] : memref<8x32xf32, #tpu.memory_space<vmem>>, vector<8x32xf32>
    %c0_1 = arith.constant 0 : index
    %c0_2 = arith.constant 0 : index
    %1 = vector.load %arg2[%c0_1, %c0_2] : memref<32x32xf32, #tpu.memory_space<vmem>>, vector<32x32xf32>
    %cst = arith.constant dense<0.000000e+00> : vector<8x32xf32>
    %2 = tpu.matmul %0, %1, %cst {dimension_numbers = #tpu.dot_dimension_numbers<[1], [0], [0], [1], [0, 0, 1, 1], [], []>} : vector<8x32xf32>, vector<32x32xf32>, vector<8x32xf32> -> vector<8x32xf32>
    %c0_3 = arith.constant 0 : index
    %c0_4 = arith.constant 0 : index
    %3 = vector.load %arg3[%c0_3, %c0_4] : memref<1x32xf32, #tpu.memory_space<vmem>>, vector<1x32xf32>
    %c0_5 = arith.constant 0 : index
    %c0_6 = arith.constant 0 : index
    %4 = vector.load %arg4[%c0_5, %c0_6] : memref<1x32xf32, #tpu.memory_space<vmem>>, vector<1x32xf32>
    %c0_7 = arith.constant 0 : index
    %c0_8 = arith.constant 0 : index
    %5 = vector.load %arg5[%c0_7, %c0_8] : memref<1x32xf32, #tpu.memory_space<vmem>>, vector<1x32xf32>
    %6 = vector.broadcast %3 : vector<1x32xf32> to vector<8x32xf32>
    %7 = arith.addf %2, %6 : vector<8x32xf32>
    %cst_9 = arith.constant 5.000000e-01 : f32
    %8 = vector.broadcast %cst_9 : f32 to vector<8x32xf32>
    %9 = arith.mulf %8, %7 : vector<8x32xf32>
    %cst_10 = arith.constant 0.707106769 : f32
    %10 = vector.broadcast %cst_10 : f32 to vector<8x32xf32>
    %11 = arith.mulf %7, %10 : vector<8x32xf32>
    %12 = math.erf %11 : vector<8x32xf32>
    %cst_11 = arith.constant 1.000000e+00 : f32
    %13 = vector.broadcast %cst_11 : f32 to vector<8x32xf32>
    %14 = arith.addf %13, %12 : vector<8x32xf32>
    %15 = arith.mulf %9, %14 : vector<8x32xf32>
    %cst_12 = arith.constant dense<0.000000e+00> : vector<8xf32>
    %16 = vector.multi_reduction <add>, %15, %cst_12 [1] : vector<8x32xf32> to vector<8xf32>
    %17 = vector.shape_cast %16 : vector<8xf32> to vector<8x1xf32>
    %18 = arith.mulf %15, %15 : vector<8x32xf32>
    %cst_13 = arith.constant dense<0.000000e+00> : vector<8xf32>
    %19 = vector.multi_reduction <add>, %18, %cst_13 [1] : vector<8x32xf32> to vector<8xf32>
    %20 = vector.shape_cast %19 : vector<8xf32> to vector<8x1xf32>
    %cst_14 = arith.constant 3.125000e-02 : f32
    %21 = vector.broadcast %cst_14 : f32 to vector<8x1xf32>
    %22 = arith.mulf %17, %21 : vector<8x1xf32>
    %cst_15 = arith.constant 3.125000e-02 : f32
    %23 = vector.broadcast %cst_15 : f32 to vector<8x1xf32>
    %24 = arith.mulf %20, %23 : vector<8x1xf32>
    %25 = arith.mulf %22, %22 : vector<8x1xf32>
    %26 = arith.subf %24, %25 : vector<8x1xf32>
    %cst_16 = arith.constant 0.000000e+00 : f32
    %27 = vector.broadcast %cst_16 : f32 to vector<8x1xf32>
    %28 = arith.maximumf %26, %27 : vector<8x1xf32>
    %cst_17 = arith.constant 9.99999996E-13 : f32
    %29 = vector.broadcast %cst_17 : f32 to vector<8x1xf32>
    %30 = arith.addf %28, %29 : vector<8x1xf32>
    %31 = math.rsqrt %30 : vector<8x1xf32>
    %32 = vector.broadcast %22 : vector<8x1xf32> to vector<8x32xf32>
    %33 = arith.subf %15, %32 : vector<8x32xf32>
    %34 = vector.broadcast %31 : vector<8x1xf32> to vector<8x32xf32>
    %35 = arith.mulf %33, %34 : vector<8x32xf32>
    %36 = vector.broadcast %4 : vector<1x32xf32> to vector<8x32xf32>
    %37 = arith.mulf %35, %36 : vector<8x32xf32>
    %38 = vector.broadcast %5 : vector<1x32xf32> to vector<8x32xf32>
    %39 = arith.addf %37, %38 : vector<8x32xf32>
    %c0_18 = arith.constant 0 : index
    %c0_19 = arith.constant 0 : index
    %40 = vector.load %arg6[%c0_18, %c0_19] : memref<8x32xf32, #tpu.memory_space<vmem>>, vector<8x32xf32>
    tpu.vector_store %arg6[%c0_18, %c0_19], %39 {strides = array<i32>} : memref<8x32xf32, #tpu.memory_space<vmem>>, vector<8x32xf32>,
    return
  }
  func.func @transform_0(%arg0: i32) -> (i32, i32) {
    %c0_i32 = arith.constant 0 : i32
    %c0_i32_0 = arith.constant 0 : i32
    return %arg0, %c0_i32 : i32, i32
  }
  func.func @transform_1(%arg0: i32) -> (i32, i32) {
    %c0_i32 = arith.constant 0 : i32
    %c0_i32_0 = arith.constant 0 : i32
    %c0_i32_1 = arith.constant 0 : i32
    return %c0_i32, %c0_i32_0 : i32, i32
  }
  func.func @transform_2(%arg0: i32) -> (i32, i32) {
    %c0_i32 = arith.constant 0 : i32
    %c0_i32_0 = arith.constant 0 : i32
    %c0_i32_1 = arith.constant 0 : i32
    return %c0_i32, %c0_i32_0 : i32, i32
  }
  func.func @transform_3(%arg0: i32) -> (i32, i32) {
    %c0_i32 = arith.constant 0 : i32
    %c0_i32_0 = arith.constant 0 : i32
    %c0_i32_1 = arith.constant 0 : i32
    return %c0_i32, %c0_i32_0 : i32, i32
  }
  func.func @transform_4(%arg0: i32) -> (i32, i32) {
    %c0_i32 = arith.constant 0 : i32
    %c0_i32_0 = arith.constant 0 : i32
    %c0_i32_1 = arith.constant 0 : i32
    return %c0_i32, %c0_i32_0 : i32, i32
  }
  func.func @transform_5(%arg0: i32) -> (i32, i32) {
    %c0_i32 = arith.constant 0 : i32
    %c0_i32_0 = arith.constant 0 : i32
    return %arg0, %c0_i32 : i32, i32
  }
}

</mosaic_0001>

<bundles_post_ra>
// kernel: tpu_custom_call.1
= control target key start
LH: loop header
LB: loop body
LE: loop exit
PB: predicated region body
PF: predicated region fallthrough
CT: control target
= control target key end

     0   :  { %10 = vsyncpa [#allocation3], 0  ;;  %s960_s0 = inlined_call_operand.hbm [shape: f32[16,32], index: 0, kind: input, shape index: {}]   ;;  %s961_s1 = inlined_call_operand.hbm [shape: f32[32,32], index: 1, kind: input, shape index: {}]   ;;  %s962_s2 = inlined_call_operand.vmem [shape: f32[1,32], index: 2, kind: input, shape index: {}]   ;;  %s963_s3 = inlined_call_operand.vmem [shape: f32[1,32], index: 3, kind: input, shape index: {}]   ;;  %s964_s4 = inlined_call_operand.vmem [shape: f32[1,32], index: 4, kind: input, shape index: {}]   ;;  %s965_s5 = inlined_call_operand.hbm [shape: f32[16,32], index: 5, kind: output, shape index: {}]  }
   0x1   :  { %12 = vsyncpa [#allocation3 + $0x1], 0 }
   0x2   :  { %13 = vsyncpa [#allocation6], 0 }
   0x3   :  { %14 = vsyncpa [#allocation4], 0 }
   0x4   :  { %16 = vsyncpa [#allocation4 + $0x1], 0  ;;  %s747_s18 = smov 0   ;;  %s749_s19 = smov 0  }
   0x5   :  { %s751_s20 = smov 0   ;;  %s753_s21 = smov 0  }
   0x6 LB: > { %s768_s22 = sadd.s32 4294967295, %s707_s21   ;;  %s473_s23 = sadd.s32 4294967294, %s707_s21   ;;  %s707_s21 = sphi %s753_s21, %s985_s21   ;;  %s703_s20 = sphi %s751_s20, %s984_s20   ;;  %s699_s19 = sphi %s749_s19, %s983_s19   ;;  %s695_s18 = sphi %s747_s18, %s982_s18  }
   0x7   : > { %p42_p0 = scmp.ne.s32.totalorder %s699_s19, %s695_s18  ;;  %p966_p1 = scmp.eq.s32.totalorder %s768_s22, 0 }
   0x8   : > { %p156_p3 = scmp.eq.s32.totalorder %s473_s23, 1  ;;  %p474_p5 = scmp.ge.s32.totalorder %s707_s21, 1 }
   0x9   : > { %p777_p4 = por %p966_p1, %p42_p0  ;;  %p163_p7 = scmp.lt.s32.totalorder %s707_s21, 3 }
   0xa   : > { %p782_p6 = por %p156_p3, %p42_p0  ;;  %s709_s27 = smov [#allocation5]  }
   0xb   : > { %s969_s24 = scalar_select %p777_p4, 1, 0 }
   0xc   : > { %s970_s25 = scalar_select %p782_p6, 1, 0 }
   0xd   : > { %p787_p8 = pnand %p474_p5, %p163_p7  ;;  %s175_s28 = sshll.u32 %s709_s27, 4  ;;  %s791_s28 = int_to_ptr.vmem [resolvable:$true] %s175_s28 }
   0xe   : > { %s803_s30 = sadd.s32 1, %s707_s21   ;;  %s29_s6 = sadd.s32 1, %s703_s20 }
   0xf   : > { %s971_s26 = scalar_select %p787_p8, 1, 0 }
  0x10   : > { %p521_p9 = pneg %p787_p8  ;;  %s26_s7 = ssub.s32 %s707_s21, %s803_s30 }
  0x11   : > { %s579_s10 = scalar_lea.hbm %s961_s1, 512 }
  0x12   : > { %p798_p11 = pnand %p521_p9, %p966_p1  ;;  %p580_p12 = scmp.ne.s32.totalorder %s961_s1, %s579_s10 }
  0x13   : > { %p586_p5 = scmp.lt.u32.totalorder %s579_s10, %s961_s1 }
  0x14   : > { %p581_p13 = pneg %p798_p11 }
  0x16   : > { %p582_p0 = pnand %p581_p13, %p580_p12 }
  0x18   : > { %p583_p3 = pneg %p582_p0 }
  0x1a   : > { %p588_p7 = pnand %p586_p5, %p583_p3 }
  0x1c   : > { %591 = shalt.err (!%p588_p7)
}
  0x1d   : > { %s592_s15 = scalar_lea.vmem %s791_s28, 512  ;;  %p600_p2 = scmp.lt.s32.totalorder %s791_s28, %s791_s28 }
  0x1e   : > { %p593_p9 = scmp.ne.s32.totalorder %s791_s28, %s592_s15  ;;  %p601_p6 = scmp.lt.s32.totalorder %s592_s15, %s592_s15 }
  0x20   : > { %p595_p10 = pnand %p593_p9, %p581_p13  ;;  %p602_p4 = por %p601_p6, %p600_p2 }
  0x22   : > { %p596_p1 = pneg %p595_p10 }
  0x24   : > { %p603_p8 = pnand %p602_p4, %p596_p1 }
  0x26   : > { %606 = shalt.err (!%p603_p8)
}
  0x27   : > { %s710_s16 = smov 128   ;;  %s711_s17 = smov 8  }
  0x28   : > { %524 = dma.hbm_to_vmem [thread:$0]  (!%p798_p11), %s961_s1, 512, %s791_s28, [#allocation6], %s710_s16, %s710_s16, %s711_s17  }
  0x29   : > { %p27_p2 = scmp.eq.s32.totalorder %s26_s7, 0  ;;  %p36_p1 = scmp.ne.s32.totalorder %s703_s20, %s699_s19 }
  0x2a   : > { %p37_p4 = scmp.eq.s32.totalorder %s707_s21, 0  ;;  %p534_p6 = scmp.lt.s32.totalorder %s707_s21, 2 }
  0x2b   : > { %s834_s8 = scalar_select %p27_p2, %s703_s20, %s29_s6  }
  0x2c   : > { %p38_p8 = por %p37_p4, %p36_p1  ;;  %p973_p10 = scmp.eq.s32.totalorder %s768_s22, 1 }
  0x2d   : > { %s198_s10 = sand.u32 1, %s703_s20   ;;  %s478_s11 = sshll.u32 %s707_s21, 7 }
  0x2e   : > { %p838_p12 = por %p973_p10, %p36_p1  ;;  %s477_s12 = sshll.u32 %s198_s10, 3 }
  0x2f   : > { %s847_s14 = scalar_lea.hbm %s960_s0, %s478_s11  ;;  %s202_s28 = scalar_lea.vmem [#allocation2], %s477_s12 }
  0x30   : > { %s209_s6 = sshll.u32 %s202_s28, 4  ;;  %p849_p11 = pnand %p534_p6, %p38_p8  ;;  %s853_s6 = int_to_ptr.vmem [resolvable:$true] %s209_s6 }
  0x31   : > { %s199_s15 = scalar_lea.sflag [#allocation3], %s198_s10  ;;  %s607_s16 = scalar_lea.hbm %s847_s14, 128 }
  0x32   : > { %p608_p13 = scmp.ne.s32.totalorder %s847_s14, %s607_s16  ;;  %p609_p0 = pneg %p849_p11 }
  0x33   : > { %s612_s27 = scalar_lea.hbm %s960_s0, 256  ;;  %p613_p7 = scmp.lt.u32.totalorder %s847_s14, %s960_s0 }
  0x34   : > { %p610_p3 = pnand %p609_p0, %p608_p13  ;;  %p614_p9 = scmp.lt.u32.totalorder %s612_s27, %s607_s16 }
  0x35   : > { %p616_p1 = scmp.lt.u32.totalorder %s607_s16, %s847_s14 }
  0x36   : > { %p611_p5 = pneg %p610_p3  ;;  %p615_p2 = por %p614_p9, %p613_p7 }
  0x38   : > { %p617_p4 = por %p616_p1, %p615_p2 }
  0x3a   : > { %p618_p6 = pnand %p617_p4, %p611_p5 }
  0x3c   : > { %621 = shalt.err (!%p618_p6)
}
  0x3d   : > { %s622_s10 = scalar_lea.vmem %s853_s6, 128  ;;  %s712_s29 = smov [#allocation2]  }
  0x3e   : > { %p623_p8 = scmp.ne.s32.totalorder %s853_s6, %s622_s10  ;;  %s627_s13 = sshll.u32 %s712_s29, 4  ;;  %s628_s13 = int_to_ptr.vmem [resolvable:$false] %s627_s13 }
  0x3f   : > { %s629_s28 = scalar_lea.vmem %s628_s13, 256  ;;  %p630_p3 = scmp.lt.s32.totalorder %s853_s6, %s628_s13 }
  0x40   : > { %p625_p10 = pnand %p623_p8, %p609_p0  ;;  %p631_p7 = scmp.lt.s32.totalorder %s629_s28, %s622_s10 }
  0x42   : > { %p626_p13 = pneg %p625_p10  ;;  %p632_p9 = por %p631_p7, %p630_p3 }
  0x44   : > { %p633_p2 = pnand %p632_p9, %p626_p13 }
  0x46   : > { %636 = shalt.err (!%p633_p2)
}
  0x47   : > { %528 = dma.hbm_to_vmem [thread:$0]  (!%p849_p11), %s847_s14, 128, %s853_s6, %s199_s15  }
  0x48   : > { %p976_p5 = scmp.ne.s32.totalorder %s971_s26, 0 }
  0x49   : > { %s883_s16 = sand.u32 (!%p976_p5), 1, %s699_s19   ;;  %p977_p0 = scmp.ne.s32.totalorder (!%p976_p5), %s969_s24, 0 }
  0x4a   : > { %218 = sbr.rel (%p976_p5) target bundleno = 512 (0x200), region = 40  ;;  %s480_s17 = sshll.u32 (!%p976_p5), %s883_s16, 3 }
  0x4b   : > { %s221_s23 = scalar_lea.sflag (!%p976_p5), [#allocation3], %s883_s16  ;;  %s224_s27 = scalar_lea.vmem (!%p976_p5), [#allocation2], %s480_s17 }
  0x51   : > { %682 = dma.done.wait (%p977_p0), %s221_s23, 128  }
  0x52   : > { %684 = vsyncadd (%p977_p0), %s221_s23, 4294967168  ;;  %p978_p11 = scmp.eq.s32.totalorder %s768_s22, 0 }
  0x54   : > { %686 = dma.done.wait (%p978_p11), [#allocation6], 512   ;;  %p979_p1 = pmov %p978_p11 }
  0x55   : > { %v713_v0 = vmov 0.0|0.0   ;;  %vm714_vm0 = vmmov 0   ;;  %v715_v1 = vmov 0.0   ;;  %v256_v2 = vld [vmem:[#allocation5] sm:$0xff]  ;;  %v257_v3 = vld [vmem:[#allocation5 + $0x8] sm:$0xff]  ;;  %v258_v4 = vld [vmem:[#allocation5 + $0x10] sm:$0xff] }
  0x56   : > { %688 = vsyncadd (%p979_p1), [#allocation6], 4294966784  ;;  %507 = vmatprep.subr.bf16.mxu0 %v713_v0  ;;  %504 = vmatprep.mubr.msk.f32.mxu0 %vm714_vm0, %v715_v1  ;;  %v508_v5 = vpack.c.bf16 %v257_v3, %v256_v2  ;;  %v259_v6 = vld [vmem:[#allocation5 + $0x18] sm:$0xff]  ;;  %vm269_vm1 = vcmask 261120   ;;  %v483_v9 = vld [vmem:[%s962_s2] ss:$0 sm:$0xff] }
  0x57   : > { %v511_v7 = vpack.c.bf16 %v259_v6, %v258_v4  ;;  %v255_v8 = vld [vmem:[%s224_s27] sm:$0xff]  ;;  %s488_s11 = sshll.u32 %s768_s22, 7  ;;  %s254_s12 = scalar_lea.vmem [#allocation7], %s480_s17 }
  0x58   : > { %509 = vmatpush3.bf16.msra.mxu0 %v508_v5  ;;  %v485_v31 = vld [vmem:[%s963_s3] ss:$0 sm:$0xff]  ;;  %s393_s10 = sshll.u32 %s254_s12, 4  ;;  %s915_s28 = scalar_lea.hbm %s965_s5, %s488_s11  ;;  %s917_s10 = int_to_ptr.vmem [resolvable:$true] %s393_s10 }
  0x59   : > { %510 = vmatprep.subr.bf16.mxu0 %v713_v0  ;;  %v486_v33 = vld [vmem:[%s964_s4] ss:$0 sm:$0xff]  ;;  %s380_s23 = scalar_lea.sflag [#allocation4], %s883_s16  ;;  %s637_s27 = scalar_lea.vmem %s917_s10, 128 }
  0x5a   : > { %p638_p4 = scmp.ne.s32.totalorder %s917_s10, %s637_s27  ;;  %s716_s22 = smov [#allocation7]  }
  0x5b   : > { %s641_s17 = sshll.u32 %s716_s22, 4  ;;  %s642_s17 = int_to_ptr.vmem [resolvable:$false] %s641_s17 }
  0x5c   : > { %512 = vmatpush3.bf16.msra.mxu0 %v511_v7  ;;  %p639_p6 = pnand %p638_p4, %p838_p12  ;;  %s643_s24 = scalar_lea.vmem %s642_s17, 256 }
  0x5d   : > { %p644_p10 = scmp.lt.s32.totalorder %s917_s10, %s642_s17  ;;  %p645_p13 = scmp.lt.s32.totalorder %s643_s24, %s637_s27 }
  0x5e   : > { %p640_p8 = pneg %p639_p6 }
  0x5f   : > { %505 = vmatmul.mubr.msk.f32.vlgmr.msra.gmra.mrb[0].mxu0 %vm269_vm1, %v255_v8  ;;  %p646_p3 = por %p645_p13, %p644_p10 }
  0x61   : > { %p647_p7 = pnand %p646_p3, %p640_p8 }
 0x132   : > { %v339_v10 = vpop.f32.mrb[0].mxu0 }
 0x133   : > { %v340_v11 = vadd.f32 %v483_v9, %v339_v10  ;;  %v506_v12 = vpop.f32.mrb[1].mxu0 }
 0x135   : > { %v344_v13 = vmul.f32 0.70710677, %v340_v11  ;;  %v343_v15 = vmul.f32 0.5, %v340_v11 }
 0x137   : > { %575 = verf.f32 %v344_v13 }
 0x141   : > { %v576_v14 = vpop.eup %575 }
 0x142   : > { %v346_v16 = vadd.f32 1.0, %v576_v14 }
 0x144   : > { %v347_v17 = vmul.f32 %v346_v16, %v343_v15 }
 0x146   : > { %v348_v18 = vsel %vm269_vm1, %v347_v17, 0.0  ;;  %v351_v19 = vmul.f32 %v347_v17, %v347_v17 }
 0x147   : > { %349 = vadd.xlane.f32.xlu0 %v348_v18 }
 0x148   : > { %v352_v20 = vsel %vm269_vm1, %v351_v19, 0.0 }
 0x14b   : > { %353 = vadd.xlane.f32.xlu0 %v352_v20 }
 0x1d4   : > { %v350_v21 = vpop.xlane.xlu0 %349 }
 0x1d5   : > { %v355_v22 = vmul.f32 0.03125, %v350_v21 }
 0x1d7   : > { %v357_v24 = vmul.f32 %v355_v22, %v355_v22  ;;  %v362_v29 = vsub.f32 %v347_v17, %v355_v22 }
 0x1d8   : > { %v354_v23 = vpop.xlane.xlu0 %353 }
 0x1d9   : > { %v356_v25 = vmul.f32 0.03125, %v354_v23 }
 0x1db   : > { %v358_v26 = vsub.f32 %v356_v25, %v357_v24 }
 0x1dd   : > { %v359_v27 = vmax.f32 %v358_v26, 0.0 }
 0x1df   : > { %v360_v28 = vadd.f32 1e-12, %v359_v27 }
 0x1e1   : > { %577 = vrsqrt.f32 %v360_v28 }
 0x1eb   : > { %v578_v30 = vpop.eup %577 }
 0x1ec   : > { %v363_v32 = vmul.f32 %v578_v30, %v362_v29 }
 0x1ee   : > { %v370_v34 = vmul.f32 %v485_v31, %v363_v32 }
 0x1f0   : > { %v377_v35 = vadd.f32 %v486_v33, %v370_v34 }
 0x1f2   : > { %378 = vst.msk [vmem:[%s254_s12] sm:$0xff] %vm269_vm1, %v377_v35 }
 0x1f3   : > { %650 = shalt.err (!%p647_p7)
}
 0x1f4   : > { %s651_s16 = scalar_lea.hbm %s915_s28, 128  ;;  %s655_s6 = scalar_lea.hbm %s965_s5, 256 }
 0x1f5   : > { %p652_p9 = scmp.ne.s32.totalorder %s915_s28, %s651_s16  ;;  %p656_p0 = scmp.lt.u32.totalorder %s915_s28, %s965_s5 }
 0x1f6   : > { %p657_p11 = scmp.lt.u32.totalorder %s655_s6, %s651_s16  ;;  %p659_p4 = scmp.lt.u32.totalorder %s651_s16, %s915_s28 }
 0x1f7   : > { %p653_p2 = pnand %p652_p9, %p838_p12 }
 0x1f8   : > { %p658_p1 = por %p657_p11, %p656_p0 }
 0x1f9   : > { %p654_p5 = pneg %p653_p2 }
 0x1fa   : > { %p660_p6 = por %p659_p4, %p658_p1 }
 0x1fc   : > { %p661_p8 = pnand %p660_p6, %p654_p5 }
 0x1fe   : > { %664 = shalt.err (!%p661_p8)
}
 0x1ff   : > { %519 = dma.vmem_to_hbm [thread:$0]  (%p838_p12), %s917_s10, 128, %s915_s28, %s380_s23  }
 0x200 PF: > { %s405_s11 = sand.u32 1, %s695_s18   ;;  %p980_p10 = scmp.ne.s32.totalorder %s970_s25, 0 }
 0x201   : > { %p981_p13 = scmp.ge.s32.totalorder %s707_s21, 2  ;;  %s406_s12 = scalar_lea.sflag [#allocation4], %s405_s11 }
 0x203   : > { %p530_p3 = pnand %p981_p13, %p980_p10 }
 0x205   : > { %690 = dma.done.wait (!%p530_p3), %s406_s12, 128  }
 0x206   : > { %692 = vsyncadd (!%p530_p3), %s406_s12, 4294967168  ;;  %p19_p7 = scmp.ge.s32.totalorder %s803_s30, 4   ;;  %s982_s18 = smov %s699_s19 }
 0x207   : > { %s983_s19 = smov %s703_s20  ;;  %s984_s20 = smov %s834_s8 }
 0x208   : > { %s985_s21 = smov %s803_s30  ;;  %21 = sbr.rel (!%p19_p7) target bundleno = 6 (0x6), region = 89 }
 0x20f   :  { %411 = vsyncpa [#allocation3], 1 }
 0x210   :  { %413 = vsyncpa [#allocation3 + $0x1], 1 }
 0x211   :  { %414 = vsyncpa [#allocation6], 1 }
 0x212   :  { %415 = vsyncpa [#allocation4], 1 }
 0x213   :  { %417 = vsyncpa [#allocation4 + $0x1], 1 }

// kernel: tpu_custom_call.1
= control target key start
LH: loop header
LB: loop body
LE: loop exit
PB: predicated region body
PF: predicated region fallthrough
CT: control target
= control target key end

     0   :  { %10 = vsyncpa [#allocation3], 0  ;;  %s960_s0 = inlined_call_operand.hbm [shape: f32[16,32], index: 0, kind: input, shape index: {}]   ;;  %s961_s1 = inlined_call_operand.hbm [shape: f32[32,32], index: 1, kind: input, shape index: {}]   ;;  %s962_s2 = inlined_call_operand.vmem [shape: f32[1,32], index: 2, kind: input, shape index: {}]   ;;  %s963_s3 = inlined_call_operand.vmem [shape: f32[1,32], index: 3, kind: input, shape index: {}]   ;;  %s964_s4 = inlined_call_operand.vmem [shape: f32[1,32], index: 4, kind: input, shape index: {}]   ;;  %s965_s5 = inlined_call_operand.hbm [shape: f32[16,32], index: 5, kind: output, shape index: {}]  }
   0x1   :  { %12 = vsyncpa [#allocation3 + $0x1], 0 }
   0x2   :  { %13 = vsyncpa [#allocation6], 0 }
   0x3   :  { %14 = vsyncpa [#allocation4], 0 }
   0x4   :  { %16 = vsyncpa [#allocation4 + $0x1], 0  ;;  %s747_s18 = smov 0   ;;  %s749_s19 = smov 0  }
   0x5   :  { %s751_s20 = smov 0   ;;  %s753_s21 = smov 0  }
   0x6 LB: > { %s768_s22 = sadd.s32 4294967295, %s707_s21   ;;  %s473_s23 = sadd.s32 4294967294, %s707_s21   ;;  %s707_s21 = sphi %s753_s21, %s985_s21   ;;  %s703_s20 = sphi %s751_s20, %s984_s20   ;;  %s699_s19 = sphi %s749_s19, %s983_s19   ;;  %s695_s18 = sphi %s747_s18, %s982_s18  }
   0x7   : > { %p42_p0 = scmp.ne.s32.totalorder %s699_s19, %s695_s18  ;;  %p966_p1 = scmp.eq.s32.totalorder %s768_s22, 0 }
   0x8   : > { %p156_p3 = scmp.eq.s32.totalorder %s473_s23, 1  ;;  %p474_p5 = scmp.ge.s32.totalorder %s707_s21, 1 }
   0x9   : > { %p777_p4 = por %p966_p1, %p42_p0  ;;  %p163_p7 = scmp.lt.s32.totalorder %s707_s21, 3 }
   0xa   : > { %p782_p6 = por %p156_p3, %p42_p0  ;;  %s709_s27 = smov [#allocation5]  }
   0xb   : > { %s969_s24 = scalar_select %p777_p4, 1, 0 }
   0xc   : > { %s970_s25 = scalar_select %p782_p6, 1, 0 }
   0xd   : > { %p787_p8 = pnand %p474_p5, %p163_p7  ;;  %s175_s28 = sshll.u32 %s709_s27, 4  ;;  %s791_s28 = int_to_ptr.vmem [resolvable:$true] %s175_s28 }
   0xe   : > { %s803_s30 = sadd.s32 1, %s707_s21   ;;  %s29_s6 = sadd.s32 1, %s703_s20 }
   0xf   : > { %s971_s26 = scalar_select %p787_p8, 1, 0 }
  0x10   : > { %p521_p9 = pneg %p787_p8  ;;  %s26_s7 = ssub.s32 %s707_s21, %s803_s30 }
  0x11   : > { %s579_s10 = scalar_lea.hbm %s961_s1, 512 }
  0x12   : > { %p798_p11 = pnand %p521_p9, %p966_p1  ;;  %p580_p12 = scmp.ne.s32.totalorder %s961_s1, %s579_s10 }
  0x13   : > { %p586_p5 = scmp.lt.u32.totalorder %s579_s10, %s961_s1 }
  0x14   : > { %p581_p13 = pneg %p798_p11 }
  0x16   : > { %p582_p0 = pnand %p581_p13, %p580_p12 }
  0x18   : > { %p583_p3 = pneg %p582_p0 }
  0x1a   : > { %p588_p7 = pnand %p586_p5, %p583_p3 }
  0x1c   : > { %591 = shalt.err (!%p588_p7)
}
  0x1d   : > { %s592_s15 = scalar_lea.vmem %s791_s28, 512  ;;  %p600_p2 = scmp.lt.s32.totalorder %s791_s28, %s791_s28 }
  0x1e   : > { %p593_p9 = scmp.ne.s32.totalorder %s791_s28, %s592_s15  ;;  %p601_p6 = scmp.lt.s32.totalorder %s592_s15, %s592_s15 }
  0x20   : > { %p595_p10 = pnand %p593_p9, %p581_p13  ;;  %p602_p4 = por %p601_p6, %p600_p2 }
  0x22   : > { %p596_p1 = pneg %p595_p10 }
  0x24   : > { %p603_p8 = pnand %p602_p4, %p596_p1 }
  0x26   : > { %606 = shalt.err (!%p603_p8)
}
  0x27   : > { %s710_s16 = smov 128   ;;  %s711_s17 = smov 8  }
  0x28   : > { %524 = dma.hbm_to_vmem [thread:$0]  (!%p798_p11), %s961_s1, 512, %s791_s28, [#allocation6], %s710_s16, %s710_s16, %s711_s17  }
  0x29   : > { %p27_p2 = scmp.eq.s32.totalorder %s26_s7, 0  ;;  %p36_p1 = scmp.ne.s32.totalorder %s703_s20, %s699_s19 }
  0x2a   : > { %p37_p4 = scmp.eq.s32.totalorder %s707_s21, 0  ;;  %p534_p6 = scmp.lt.s32.totalorder %s707_s21, 2 }
  0x2b   : > { %s834_s8 = scalar_select %p27_p2, %s703_s20, %s29_s6  }
  0x2c   : > { %p38_p8 = por %p37_p4, %p36_p1  ;;  %p973_p10 = scmp.eq.s32.totalorder %s768_s22, 1 }
  0x2d   : > { %s198_s10 = sand.u32 1, %s703_s20   ;;  %s478_s11 = sshll.u32 %s707_s21, 7 }
  0x2e   : > { %p838_p12 = por %p973_p10, %p36_p1  ;;  %s477_s12 = sshll.u32 %s198_s10, 3 }
  0x2f   : > { %s847_s14 = scalar_lea.hbm %s960_s0, %s478_s11  ;;  %s202_s28 = scalar_lea.vmem [#allocation2], %s477_s12 }
  0x30   : > { %s209_s6 = sshll.u32 %s202_s28, 4  ;;  %p849_p11 = pnand %p534_p6, %p38_p8  ;;  %s853_s6 = int_to_ptr.vmem [resolvable:$true] %s209_s6 }
  0x31   : > { %s199_s15 = scalar_lea.sflag [#allocation3], %s198_s10  ;;  %s607_s16 = scalar_lea.hbm %s847_s14, 128 }
  0x32   : > { %p608_p13 = scmp.ne.s32.totalorder %s847_s14, %s607_s16  ;;  %p609_p0 = pneg %p849_p11 }
  0x33   : > { %s612_s27 = scalar_lea.hbm %s960_s0, 256  ;;  %p613_p7 = scmp.lt.u32.totalorder %s847_s14, %s960_s0 }
  0x34   : > { %p610_p3 = pnand %p609_p0, %p608_p13  ;;  %p614_p9 = scmp.lt.u32.totalorder %s612_s27, %s607_s16 }
  0x35   : > { %p616_p1 = scmp.lt.u32.totalorder %s607_s16, %s847_s14 }
  0x36   : > { %p611_p5 = pneg %p610_p3  ;;  %p615_p2 = por %p614_p9, %p613_p7 }
  0x38   : > { %p617_p4 = por %p616_p1, %p615_p2 }
  0x3a   : > { %p618_p6 = pnand %p617_p4, %p611_p5 }
  0x3c   : > { %621 = shalt.err (!%p618_p6)
}
  0x3d   : > { %s622_s10 = scalar_lea.vmem %s853_s6, 128  ;;  %s712_s29 = smov [#allocation2]  }
  0x3e   : > { %p623_p8 = scmp.ne.s32.totalorder %s853_s6, %s622_s10  ;;  %s627_s13 = sshll.u32 %s712_s29, 4  ;;  %s628_s13 = int_to_ptr.vmem [resolvable:$false] %s627_s13 }
  0x3f   : > { %s629_s28 = scalar_lea.vmem %s628_s13, 256  ;;  %p630_p3 = scmp.lt.s32.totalorder %s853_s6, %s628_s13 }
  0x40   : > { %p625_p10 = pnand %p623_p8, %p609_p0  ;;  %p631_p7 = scmp.lt.s32.totalorder %s629_s28, %s622_s10 }
  0x42   : > { %p626_p13 = pneg %p625_p10  ;;  %p632_p9 = por %p631_p7, %p630_p3 }
  0x44   : > { %p633_p2 = pnand %p632_p9, %p626_p13 }
  0x46   : > { %636 = shalt.err (!%p633_p2)
}
  0x47   : > { %528 = dma.hbm_to_vmem [thread:$0]  (!%p849_p11), %s847_s14, 128, %s853_s6, %s199_s15  }
  0x48   : > { %p976_p5 = scmp.ne.s32.totalorder %s971_s26, 0 }
  0x49   : > { %s883_s16 = sand.u32 (!%p976_p5), 1, %s699_s19   ;;  %p977_p0 = scmp.ne.s32.totalorder (!%p976_p5), %s969_s24, 0 }
  0x4a   : > { %218 = sbr.rel (%p976_p5) target bundleno = 512 (0x200), region = 40  ;;  %s480_s17 = sshll.u32 (!%p976_p5), %s883_s16, 3 }
  0x4b   : > { %s221_s23 = scalar_lea.sflag (!%p976_p5), [#allocation3], %s883_s16  ;;  %s224_s27 = scalar_lea.vmem (!%p976_p5), [#allocation2], %s480_s17 }
  0x51   : > { %682 = dma.done.wait (%p977_p0), %s221_s23, 128  }
  0x52   : > { %684 = vsyncadd (%p977_p0), %s221_s23, 4294967168  ;;  %p978_p11 = scmp.eq.s32.totalorder %s768_s22, 0 }
  0x54   : > { %686 = dma.done.wait (%p978_p11), [#allocation6], 512   ;;  %p979_p1 = pmov %p978_p11 }
  0x55   : > { %v713_v0 = vmov 0.0|0.0   ;;  %vm714_vm0 = vmmov 0   ;;  %v715_v1 = vmov 0.0   ;;  %v256_v2 = vld [vmem:[#allocation5] sm:$0xff]  ;;  %v257_v3 = vld [vmem:[#allocation5 + $0x8] sm:$0xff]  ;;  %v258_v4 = vld [vmem:[#allocation5 + $0x10] sm:$0xff] }
  0x56   : > { %688 = vsyncadd (%p979_p1), [#allocation6], 4294966784  ;;  %507 = vmatprep.subr.bf16.mxu0 %v713_v0  ;;  %504 = vmatprep.mubr.msk.f32.mxu0 %vm714_vm0, %v715_v1  ;;  %v508_v5 = vpack.c.bf16 %v257_v3, %v256_v2  ;;  %v259_v6 = vld [vmem:[#allocation5 + $0x18] sm:$0xff]  ;;  %vm269_vm1 = vcmask 261120   ;;  %v483_v9 = vld [vmem:[%s962_s2] ss:$0 sm:$0xff] }
  0x57   : > { %v511_v7 = vpack.c.bf16 %v259_v6, %v258_v4  ;;  %v255_v8 = vld [vmem:[%s224_s27] sm:$0xff]  ;;  %s488_s11 = sshll.u32 %s768_s22, 7  ;;  %s254_s12 = scalar_lea.vmem [#allocation7], %s480_s17 }
  0x58   : > { %509 = vmatpush3.bf16.msra.mxu0 %v508_v5  ;;  %v485_v31 = vld [vmem:[%s963_s3] ss:$0 sm:$0xff]  ;;  %s393_s10 = sshll.u32 %s254_s12, 4  ;;  %s915_s28 = scalar_lea.hbm %s965_s5, %s488_s11  ;;  %s917_s10 = int_to_ptr.vmem [resolvable:$true] %s393_s10 }
  0x59   : > { %510 = vmatprep.subr.bf16.mxu0 %v713_v0  ;;  %v486_v33 = vld [vmem:[%s964_s4] ss:$0 sm:$0xff]  ;;  %s380_s23 = scalar_lea.sflag [#allocation4], %s883_s16  ;;  %s637_s27 = scalar_lea.vmem %s917_s10, 128 }
  0x5a   : > { %p638_p4 = scmp.ne.s32.totalorder %s917_s10, %s637_s27  ;;  %s716_s22 = smov [#allocation7]  }
  0x5b   : > { %s641_s17 = sshll.u32 %s716_s22, 4  ;;  %s642_s17 = int_to_ptr.vmem [resolvable:$false] %s641_s17 }
  0x5c   : > { %512 = vmatpush3.bf16.msra.mxu0 %v511_v7  ;;  %p639_p6 = pnand %p638_p4, %p838_p12  ;;  %s643_s24 = scalar_lea.vmem %s642_s17, 256 }
  0x5d   : > { %p644_p10 = scmp.lt.s32.totalorder %s917_s10, %s642_s17  ;;  %p645_p13 = scmp.lt.s32.totalorder %s643_s24, %s637_s27 }
  0x5e   : > { %p640_p8 = pneg %p639_p6 }
  0x5f   : > { %505 = vmatmul.mubr.msk.f32.vlgmr.msra.gmra.mrb[0].mxu0 %vm269_vm1, %v255_v8  ;;  %p646_p3 = por %p645_p13, %p644_p10 }
  0x61   : > { %p647_p7 = pnand %p646_p3, %p640_p8 }
 0x132   : > { %v339_v10 = vpop.f32.mrb[0].mxu0 }
 0x133   : > { %v340_v11 = vadd.f32 %v483_v9, %v339_v10  ;;  %v506_v12 = vpop.f32.mrb[1].mxu0 }
 0x135   : > { %v344_v13 = vmul.f32 0.70710677, %v340_v11  ;;  %v343_v15 = vmul.f32 0.5, %v340_v11 }
 0x137   : > { %575 = verf.f32 %v344_v13 }
 0x141   : > { %v576_v14 = vpop.eup %575 }
 0x142   : > { %v346_v16 = vadd.f32 1.0, %v576_v14 }
 0x144   : > { %v347_v17 = vmul.f32 %v346_v16, %v343_v15 }
 0x146   : > { %v348_v18 = vsel %vm269_vm1, %v347_v17, 0.0  ;;  %v351_v19 = vmul.f32 %v347_v17, %v347_v17 }
 0x147   : > { %349 = vadd.xlane.f32.xlu0 %v348_v18 }
 0x148   : > { %v352_v20 = vsel %vm269_vm1, %v351_v19, 0.0 }
 0x14b   : > { %353 = vadd.xlane.f32.xlu0 %v352_v20 }
 0x1d4   : > { %v350_v21 = vpop.xlane.xlu0 %349 }
 0x1d5   : > { %v355_v22 = vmul.f32 0.03125, %v350_v21 }
 0x1d7   : > { %v357_v24 = vmul.f32 %v355_v22, %v355_v22  ;;  %v362_v29 = vsub.f32 %v347_v17, %v355_v22 }
 0x1d8   : > { %v354_v23 = vpop.xlane.xlu0 %353 }
 0x1d9   : > { %v356_v25 = vmul.f32 0.03125, %v354_v23 }
 0x1db   : > { %v358_v26 = vsub.f32 %v356_v25, %v357_v24 }
 0x1dd   : > { %v359_v27 = vmax.f32 %v358_v26, 0.0 }
 0x1df   : > { %v360_v28 = vadd.f32 1e-12, %v359_v27 }
 0x1e1   : > { %577 = vrsqrt.f32 %v360_v28 }
 0x1eb   : > { %v578_v30 = vpop.eup %577 }
 0x1ec   : > { %v363_v32 = vmul.f32 %v578_v30, %v362_v29 }
 0x1ee   : > { %v370_v34 = vmul.f32 %v485_v31, %v363_v32 }
 0x1f0   : > { %v377_v35 = vadd.f32 %v486_v33, %v370_v34 }
 0x1f2   : > { %378 = vst.msk [vmem:[%s254_s12] sm:$0xff] %vm269_vm1, %v377_v35 }
 0x1f3   : > { %650 = shalt.err (!%p647_p7)
}
 0x1f4   : > { %s651_s16 = scalar_lea.hbm %s915_s28, 128  ;;  %s655_s6 = scalar_lea.hbm %s965_s5, 256 }
 0x1f5   : > { %p652_p9 = scmp.ne.s32.totalorder %s915_s28, %s651_s16  ;;  %p656_p0 = scmp.lt.u32.totalorder %s915_s28, %s965_s5 }
 0x1f6   : > { %p657_p11 = scmp.lt.u32.totalorder %s655_s6, %s651_s16  ;;  %p659_p4 = scmp.lt.u32.totalorder %s651_s16, %s915_s28 }
 0x1f7   : > { %p653_p2 = pnand %p652_p9, %p838_p12 }
 0x1f8   : > { %p658_p1 = por %p657_p11, %p656_p0 }
 0x1f9   : > { %p654_p5 = pneg %p653_p2 }
 0x1fa   : > { %p660_p6 = por %p659_p4, %p658_p1 }
 0x1fc   : > { %p661_p8 = pnand %p660_p6, %p654_p5 }
 0x1fe   : > { %664 = shalt.err (!%p661_p8)
}
 0x1ff   : > { %519 = dma.vmem_to_hbm [thread:$0]  (%p838_p12), %s917_s10, 128, %s915_s28, %s380_s23  }
 0x200 PF: > { %s405_s11 = sand.u32 1, %s695_s18   ;;  %p980_p10 = scmp.ne.s32.totalorder %s970_s25, 0 }
 0x201   : > { %p981_p13 = scmp.ge.s32.totalorder %s707_s21, 2  ;;  %s406_s12 = scalar_lea.sflag [#allocation4], %s405_s11 }
 0x203   : > { %p530_p3 = pnand %p981_p13, %p980_p10 }
 0x205   : > { %690 = dma.done.wait (!%p530_p3), %s406_s12, 128  }
 0x206   : > { %692 = vsyncadd (!%p530_p3), %s406_s12, 4294967168  ;;  %p19_p7 = scmp.ge.s32.totalorder %s803_s30, 4   ;;  %s982_s18 = smov %s699_s19 }
 0x207   : > { %s983_s19 = smov %s703_s20  ;;  %s984_s20 = smov %s834_s8 }
 0x208   : > { %s985_s21 = smov %s803_s30  ;;  %21 = sbr.rel (!%p19_p7) target bundleno = 6 (0x6), region = 89 }
 0x20f   :  { %411 = vsyncpa [#allocation3], 1 }
 0x210   :  { %413 = vsyncpa [#allocation3 + $0x1], 1 }
 0x211   :  { %414 = vsyncpa [#allocation6], 1 }
 0x212   :  { %415 = vsyncpa [#allocation4], 1 }
 0x213   :  { %417 = vsyncpa [#allocation4 + $0x1], 1 }

</bundles_post_ra>
